<compile_context>
chip_gen: v7x
topology: tpu7x:2x2x1
jax: 0.10.0
libtpu: 0.0.40
codegen_flags: <defaults>
</compile_context>

<pallas_src>
import jax
import jax.numpy as jnp
from jax import lax
from jax.experimental import pallas as pl
from jax.experimental.pallas import tpu as pltpu

NUM_EMBEDDINGS = 512
EMBEDDING_DIM = 64
BETA = 0.25  # commitment cost


def _make_vq_kernel(tile_n, num_embeddings, n_valid, n_pad):
    """Kernel closure over static tile size / codebook size / valid row count."""
    K = num_embeddings
    needs_mask = (n_pad != n_valid)   # static: only emit masking when padded

    def vq_kernel(x_ref, w_ref, wt_ref, wsq_ref,
                  q_ref, idx_ref, cnt_ref, lsum_ref):
        i = pl.program_id(0)

        x = x_ref[...]                                    # (tile_n, D) native dtype
        xf = x.astype(jnp.float32)

        # score_k = |w_k|^2 - 2 x.w_k   (drops the per-row |x|^2 constant,
        # which cannot change the argmin).  Cross term on the MXU.
        xw = jnp.dot(x, wt_ref[...],
                     preferred_element_type=jnp.float32)  # (tile_n, K)
        scores = wsq_ref[...] - 2.0 * xw                  # (tile_n, K) f32

        # argmin with first-occurrence tie-break (matches torch.argmin).
        min_s = jnp.min(scores, axis=1, keepdims=True)
        lane_ids = lax.broadcasted_iota(jnp.int32, scores.shape, 1)
        idx = jnp.min(jnp.where(scores <= min_s, lane_ids, K),
                      axis=1, keepdims=True)              # (tile_n, 1) int32

        # one-hot (kept in VMEM only) and codebook lookup on the MXU.
        onehot = (lane_ids == idx)                        # (tile_n, K) bool
        enc = onehot.astype(w_ref.dtype)                  # exact 0/1
        quantized = jnp.dot(enc, w_ref[...],
                            preferred_element_type=jnp.float32)  # (tile_n, D) f32

        diff = quantized - xf
        enc_f32 = onehot.astype(jnp.float32)

        if needs_mask:
            # mask rows past the true N (zero padding of a partial last tile).
            base = i * tile_n
            valid_col = (lax.broadcasted_iota(jnp.int32, (tile_n, 1), 0) + base
                         < n_valid).astype(jnp.float32)   # (tile_n, 1)
            valid_row = (lax.broadcasted_iota(jnp.int32, (1, tile_n), 1) + base
                         < n_valid).astype(jnp.float32)   # (1, tile_n)
            lsum = jnp.sum(diff * diff * valid_col)
            # per-tile counts as a tiny MXU matmul (no cross-sublane reduce).
            cnt = jnp.dot(valid_row, enc_f32,
                          preferred_element_type=jnp.float32)      # (1, K)
        else:
            lsum = jnp.sum(diff * diff)
            ones_row = jnp.ones((1, tile_n), jnp.float32)
            cnt = jnp.dot(ones_row, enc_f32,
                          preferred_element_type=jnp.float32)      # (1, K)

        lsum_ref[...] = jnp.broadcast_to(lsum, (1, 1, 1))
        cnt_ref[...] = cnt[None]                          # (1, 1, K)
        idx_ref[...] = idx
        # straight-through estimator: inputs + (quantized - inputs).detach()
        # is numerically identical to `quantized` in the forward pass.
        q_ref[...] = quantized.astype(q_ref.dtype)

    return vq_kernel


def vq_forward(inputs, embedding_w, *, tile_n=1024, beta=BETA):
    """inputs: (B, H, W, D) channels-last, D == embedding_dim."""
    input_shape = inputs.shape
    K, D = embedding_w.shape
    flat = inputs.reshape(-1, D)
    N = flat.shape[0]

    tile_n = max(8, min(tile_n, ((N + 7) // 8) * 8))      # never larger than needed
    num_tiles = -(-N // tile_n)
    n_pad = num_tiles * tile_n
    if n_pad != N:
        flat = jnp.pad(flat, ((0, n_pad - N), (0, 0)))

    # loop-invariant codebook quantities, computed once outside the kernel.
    w = embedding_w
    w_t = embedding_w.T                                   # (D, K)
    w_sq = jnp.sum(jnp.square(embedding_w.astype(jnp.float32)),
                   axis=1)[None, :]                       # (1, K) f32

    kernel = _make_vq_kernel(tile_n, K, N, n_pad)

    q, idx, cnt, lsum = pl.pallas_call(
        kernel,
        out_shape=(
            jax.ShapeDtypeStruct((n_pad, D), inputs.dtype),        # quantized (flat)
            jax.ShapeDtypeStruct((n_pad, 1), jnp.int32),           # codebook indices
            jax.ShapeDtypeStruct((num_tiles, 1, K), jnp.float32),  # per-tile counts
            jax.ShapeDtypeStruct((num_tiles, 1, 1), jnp.float32),  # per-tile sum((q-x)^2)
        ),
        grid=(num_tiles,),
        in_specs=[
            pl.BlockSpec((tile_n, D), lambda i: (i, 0)),   # streamed input rows
            pl.BlockSpec((K, D), lambda i: (0, 0)),        # resident codebook
            pl.BlockSpec((D, K), lambda i: (0, 0)),        # resident codebook^T
            pl.BlockSpec((1, K), lambda i: (0, 0)),        # resident |w|^2
        ],
        out_specs=(
            pl.BlockSpec((tile_n, D), lambda i: (i, 0)),
            pl.BlockSpec((tile_n, 1), lambda i: (i, 0)),
            pl.BlockSpec((1, 1, K), lambda i: (i, 0, 0)),
            pl.BlockSpec((1, 1, 1), lambda i: (i, 0, 0)),
        ),
        compiler_params=pltpu.CompilerParams(
            dimension_semantics=("parallel",)),
    )(flat, w, w_t, w_sq)

    quantized = q[:N].reshape(input_shape)

    # finish the reductions in plain JAX (negligible K-sized work).
    e_latent_loss = jnp.sum(lsum) / float(N * D)
    loss = beta * e_latent_loss

    counts = jnp.sum(cnt.reshape(num_tiles, K), axis=0)   # (K,)
    avg_probs = counts / float(N)
    perplexity = jnp.exp(-jnp.sum(avg_probs * jnp.log(avg_probs + 1e-10)))

    # Dense one-hot is only rebuilt here (outside the kernel) for API parity
    # with the PyTorch module; callers that only need indices/counts should
    # use `idx` / `counts` and skip this materialization.
    indices = idx[:N, 0]
    encodings = jax.nn.one_hot(indices, K, dtype=jnp.float32)

    return quantized, loss, perplexity, encodings


def vq_forward_ref(inputs, embedding_w, beta=BETA):
    """Pure-JAX reference mirroring the PyTorch eval-mode forward."""
    input_shape = inputs.shape
    K, D = embedding_w.shape
    flat = inputs.reshape(-1, D)
    distances = (jnp.sum(flat ** 2, axis=1, keepdims=True)
                 + jnp.sum(embedding_w ** 2, axis=1)
                 - 2.0 * flat @ embedding_w.T)
    idx = jnp.argmin(distances, axis=1)
    encodings = jax.nn.one_hot(idx, K, dtype=jnp.float32)
    quantized = (encodings @ embedding_w).reshape(input_shape)
    e_latent_loss = jnp.mean((quantized - inputs) ** 2)
    loss = beta * e_latent_loss
    avg_probs = jnp.mean(encodings, axis=0)
    perplexity = jnp.exp(-jnp.sum(avg_probs * jnp.log(avg_probs + 1e-10)))
    return quantized, loss, perplexity, encodings


if __name__ == "__main__":
    key = jax.random.PRNGKey(0)
    k_w, k_x = jax.random.split(key)

    # deterministic "normal_()" init for the codebook
    embedding_w = jax.random.normal(k_w, (NUM_EMBEDDINGS, EMBEDDING_DIM),
                                    dtype=jnp.float32)
    # small example input: batch=2, spatial=8x8, channels-last embedding_dim=64
    x = jax.random.normal(k_x, (2, 8, 8, EMBEDDING_DIM), dtype=jnp.float32)

    q_ref, loss_ref, perp_ref, enc_ref = vq_forward_ref(x, embedding_w)

    # exercise both the padded multi-tile path (48) and the default single-tile
    # unmasked path (1024, clamped to N).
    for tn in (48, 1024):
        quantized, loss, perplexity, encodings = vq_forward(
            x, embedding_w, tile_n=tn)
        jax.block_until_ready((quantized, loss, perplexity, encodings))

        assert jnp.allclose(quantized, q_ref, atol=1e-4, rtol=1e-4), tn
        assert jnp.allclose(loss, loss_ref, atol=1e-5, rtol=1e-5), tn
        assert jnp.allclose(perplexity, perp_ref, atol=1e-3, rtol=1e-4), tn
        assert jnp.allclose(encodings, enc_ref), tn

    print("KERNEL_OK")
</pallas_src>

<mosaic_0001>
module attributes {stable_mosaic.version = 11 : i64} {
  func.func @vq_kernel(%arg0: i32, %arg1: memref<48x64xf32, #tpu.memory_space<vmem>>, %arg2: memref<512x64xf32, #tpu.memory_space<vmem>>, %arg3: memref<64x512xf32, #tpu.memory_space<vmem>>, %arg4: memref<1x512xf32, #tpu.memory_space<vmem>>, %arg5: memref<48x64xf32, #tpu.memory_space<vmem>>, %arg6: memref<48x1xi32, #tpu.memory_space<vmem>>, %arg7: memref<1x1x512xf32, #tpu.memory_space<vmem>>, %arg8: memref<1x1x1xf32, #tpu.memory_space<vmem>>) attributes {dimension_semantics = [#tpu.dimension_semantics<parallel>], iteration_bounds = array<i64: 3>, scalar_prefetch = 0 : i64, scratch_operands = 0 : i64, tpu.core_type = #tpu.core_type<tc>, window_params = [{transform_indices = @transform_0, window_bounds = array<i64: 48, 64>}, {pipeline_mode = #tpu.pipeline_mode<synchronous>, transform_indices = @transform_1, window_bounds = array<i64: 512, 64>}, {pipeline_mode = #tpu.pipeline_mode<synchronous>, transform_indices = @transform_2, window_bounds = array<i64: 64, 512>}, {pipeline_mode = #tpu.pipeline_mode<synchronous>, transform_indices = @transform_3, window_bounds = array<i64: 1, 512>}, {transform_indices = @transform_4, window_bounds = array<i64: 48, 64>}, {transform_indices = @transform_5, window_bounds = array<i64: 48, 1>}, {transform_indices = @transform_6, window_bounds = array<i64: 1, 1, 512>}, {transform_indices = @transform_7, window_bounds = array<i64: 1, 1, 1>}]} {
    %c0 = arith.constant 0 : index
    %c0_0 = arith.constant 0 : index
    %0 = vector.load %arg1[%c0, %c0_0] : memref<48x64xf32, #tpu.memory_space<vmem>>, vector<48x64xf32>
    %c0_1 = arith.constant 0 : index
    %c0_2 = arith.constant 0 : index
    %1 = vector.load %arg3[%c0_1, %c0_2] : memref<64x512xf32, #tpu.memory_space<vmem>>, vector<64x512xf32>
    %cst = arith.constant dense<0.000000e+00> : vector<48x512xf32>
    %2 = tpu.matmul %0, %1, %cst {dimension_numbers = #tpu.dot_dimension_numbers<[1], [0], [0], [1], [0, 0, 1, 1], [], []>} : vector<48x64xf32>, vector<64x512xf32>, vector<48x512xf32> -> vector<48x512xf32>
    %c0_3 = arith.constant 0 : index
    %c0_4 = arith.constant 0 : index
    %3 = vector.load %arg4[%c0_3, %c0_4] : memref<1x512xf32, #tpu.memory_space<vmem>>, vector<1x512xf32>
    %cst_5 = arith.constant 2.000000e+00 : f32
    %4 = vector.broadcast %cst_5 : f32 to vector<48x512xf32>
    %5 = arith.mulf %4, %2 : vector<48x512xf32>
    %6 = vector.broadcast %3 : vector<1x512xf32> to vector<48x512xf32>
    %7 = arith.subf %6, %5 : vector<48x512xf32>
    %cst_6 = arith.constant dense<0x7F800000> : vector<48xf32>
    %8 = vector.multi_reduction <minimumf>, %7, %cst_6 [1] : vector<48x512xf32> to vector<48xf32>
    %9 = vector.shape_cast %8 : vector<48xf32> to vector<48x1xf32>
    %10 = tpu.iota {dimensions = array<i32: 1>} : vector<48x512xi32>
    %11 = vector.broadcast %9 : vector<48x1xf32> to vector<48x512xf32>
    %12 = arith.cmpf ole, %7, %11 : vector<48x512xf32>
    %c512_i32 = arith.constant 512 : i32
    %13 = vector.broadcast %c512_i32 : i32 to vector<48x512xi32>
    %14 = arith.select %12, %10, %13 : vector<48x512xi1>, vector<48x512xi32>
    %cst_7 = arith.constant dense<2147483647> : vector<48xi32>
    %15 = vector.multi_reduction <minsi>, %14, %cst_7 [1] : vector<48x512xi32> to vector<48xi32>
    %16 = vector.shape_cast %15 : vector<48xi32> to vector<48x1xi32>
    %17 = vector.broadcast %16 : vector<48x1xi32> to vector<48x512xi32>
    %18 = arith.cmpi eq, %10, %17 : vector<48x512xi32>
    %19 = arith.extui %18 : vector<48x512xi1> to vector<48x512xi32>
    %20 = arith.sitofp %19 : vector<48x512xi32> to vector<48x512xf32>
    %c0_8 = arith.constant 0 : index
    %c0_9 = arith.constant 0 : index
    %21 = vector.load %arg2[%c0_8, %c0_9] : memref<512x64xf32, #tpu.memory_space<vmem>>, vector<512x64xf32>
    %cst_10 = arith.constant dense<0.000000e+00> : vector<48x64xf32>
    %22 = tpu.matmul %20, %21, %cst_10 {dimension_numbers = #tpu.dot_dimension_numbers<[1], [0], [0], [1], [0, 0, 1, 1], [], []>} : vector<48x512xf32>, vector<512x64xf32>, vector<48x64xf32> -> vector<48x64xf32>
    %23 = arith.subf %22, %0 : vector<48x64xf32>
    %24 = arith.extui %18 : vector<48x512xi1> to vector<48x512xi32>
    %25 = arith.sitofp %24 : vector<48x512xi32> to vector<48x512xf32>
    %c48_i32 = arith.constant 48 : i32
    %26 = arith.muli %arg0, %c48_i32 : i32
    %27 = tpu.iota {dimensions = array<i32: 0>} : vector<48x1xi32>
    %28 = vector.broadcast %26 : i32 to vector<48x1xi32>
    %29 = arith.addi %27, %28 : vector<48x1xi32>
    %c128_i32 = arith.constant 128 : i32
    %30 = vector.broadcast %c128_i32 : i32 to vector<48x1xi32>
    %31 = arith.cmpi slt, %29, %30 : vector<48x1xi32>
    %32 = arith.extui %31 : vector<48x1xi1> to vector<48x1xi32>
    %33 = arith.sitofp %32 : vector<48x1xi32> to vector<48x1xf32>
    %34 = tpu.iota {dimensions = array<i32: 1>} : vector<1x48xi32>
    %35 = vector.broadcast %26 : i32 to vector<1x48xi32>
    %36 = arith.addi %34, %35 : vector<1x48xi32>
    %c128_i32_11 = arith.constant 128 : i32
    %37 = vector.broadcast %c128_i32_11 : i32 to vector<1x48xi32>
    %38 = arith.cmpi slt, %36, %37 : vector<1x48xi32>
    %39 = arith.extui %38 : vector<1x48xi1> to vector<1x48xi32>
    %40 = arith.sitofp %39 : vector<1x48xi32> to vector<1x48xf32>
    %41 = arith.mulf %23, %23 : vector<48x64xf32>
    %42 = vector.broadcast %33 : vector<48x1xf32> to vector<48x64xf32>
    %43 = arith.mulf %41, %42 : vector<48x64xf32>
    %44 = vector.shape_cast %43 : vector<48x64xf32> to vector<1x48x64xf32>
    %cst_12 = arith.constant dense<0.000000e+00> : vector<1xf32>
    %45 = vector.multi_reduction <add>, %44, %cst_12 [1, 2] : vector<1x48x64xf32> to vector<1xf32>
    %46 = vector.shape_cast %45 : vector<1xf32> to vector<1x1x1xf32>
    %47 = vector.extract %46[0, 0, 0] : f32 from vector<1x1x1xf32>
    %cst_13 = arith.constant dense<0.000000e+00> : vector<1x512xf32>
    %48 = tpu.matmul %40, %25, %cst_13 {dimension_numbers = #tpu.dot_dimension_numbers<[1], [0], [0], [1], [0, 0, 1, 1], [], []>} : vector<1x48xf32>, vector<48x512xf32>, vector<1x512xf32> -> vector<1x512xf32>
    %49 = vector.broadcast %47 : f32 to vector<1x1x1xf32>
    %c0_14 = arith.constant 0 : index
    %c0_15 = arith.constant 0 : index
    %c0_16 = arith.constant 0 : index
    %50 = vector.load %arg8[%c0_14, %c0_15, %c0_16] : memref<1x1x1xf32, #tpu.memory_space<vmem>>, vector<1x1x1xf32>
    tpu.vector_store %arg8[%c0_14, %c0_15, %c0_16], %49 {strides = array<i32>} : memref<1x1x1xf32, #tpu.memory_space<vmem>>, vector<1x1x1xf32>,
    %51 = vector.shape_cast %48 : vector<1x512xf32> to vector<1x1x512xf32>
    %c0_17 = arith.constant 0 : index
    %c0_18 = arith.constant 0 : index
    %c0_19 = arith.constant 0 : index
    %52 = vector.load %arg7[%c0_17, %c0_18, %c0_19] : memref<1x1x512xf32, #tpu.memory_space<vmem>>, vector<1x1x512xf32>
    tpu.vector_store %arg7[%c0_17, %c0_18, %c0_19], %51 {strides = array<i32>} : memref<1x1x512xf32, #tpu.memory_space<vmem>>, vector<1x1x512xf32>,
    %c0_20 = arith.constant 0 : index
    %c0_21 = arith.constant 0 : index
    %53 = vector.load %arg6[%c0_20, %c0_21] : memref<48x1xi32, #tpu.memory_space<vmem>>, vector<48x1xi32>
    tpu.vector_store %arg6[%c0_20, %c0_21], %16 {strides = array<i32>} : memref<48x1xi32, #tpu.memory_space<vmem>>, vector<48x1xi32>,
    %c0_22 = arith.constant 0 : index
    %c0_23 = arith.constant 0 : index
    %54 = vector.load %arg5[%c0_22, %c0_23] : memref<48x64xf32, #tpu.memory_space<vmem>>, vector<48x64xf32>
    tpu.vector_store %arg5[%c0_22, %c0_23], %22 {strides = array<i32>} : memref<48x64xf32, #tpu.memory_space<vmem>>, vector<48x64xf32>,
    return
  }
  func.func @transform_0(%arg0: i32) -> (i32, i32) {
    %c0_i32 = arith.constant 0 : i32
    %c0_i32_0 = arith.constant 0 : i32
    return %arg0, %c0_i32 : i32, i32
  }
  func.func @transform_1(%arg0: i32) -> (i32, i32) {
    %c0_i32 = arith.constant 0 : i32
    %c0_i32_0 = arith.constant 0 : i32
    %c0_i32_1 = arith.constant 0 : i32
    return %c0_i32, %c0_i32_0 : i32, i32
  }
  func.func @transform_2(%arg0: i32) -> (i32, i32) {
    %c0_i32 = arith.constant 0 : i32
    %c0_i32_0 = arith.constant 0 : i32
    %c0_i32_1 = arith.constant 0 : i32
    return %c0_i32, %c0_i32_0 : i32, i32
  }
  func.func @transform_3(%arg0: i32) -> (i32, i32) {
    %c0_i32 = arith.constant 0 : i32
    %c0_i32_0 = arith.constant 0 : i32
    %c0_i32_1 = arith.constant 0 : i32
    return %c0_i32, %c0_i32_0 : i32, i32
  }
  func.func @transform_4(%arg0: i32) -> (i32, i32) {
    %c0_i32 = arith.constant 0 : i32
    %c0_i32_0 = arith.constant 0 : i32
    return %arg0, %c0_i32 : i32, i32
  }
  func.func @transform_5(%arg0: i32) -> (i32, i32) {
    %c0_i32 = arith.constant 0 : i32
    %c0_i32_0 = arith.constant 0 : i32
    return %arg0, %c0_i32 : i32, i32
  }
  func.func @transform_6(%arg0: i32) -> (i32, i32, i32) {
    %c0_i32 = arith.constant 0 : i32
    %c0_i32_0 = arith.constant 0 : i32
    %c0_i32_1 = arith.constant 0 : i32
    return %arg0, %c0_i32, %c0_i32_0 : i32, i32, i32
  }
  func.func @transform_7(%arg0: i32) -> (i32, i32, i32) {
    %c0_i32 = arith.constant 0 : i32
    %c0_i32_0 = arith.constant 0 : i32
    %c0_i32_1 = arith.constant 0 : i32
    return %arg0, %c0_i32, %c0_i32_0 : i32, i32, i32
  }
}

</mosaic_0001>

<bundles_post_ra>
// kernel: tpu_custom_call.1
= control target key start
LH: loop header
LB: loop body
LE: loop exit
PB: predicated region body
PF: predicated region fallthrough
CT: control target
= control target key end

     0   :  { %13 = vsyncpa [#allocation3], 0  ;;  %s2994_s0 = inlined_call_operand.vmem [shape: f32[144,64], index: 0, kind: input, shape index: {}]   ;;  %s2995_s1 = inlined_call_operand.vmem [shape: f32[512,64], index: 1, kind: input, shape index: {}]   ;;  %s2996_s2 = inlined_call_operand.vmem [shape: f32[64,512], index: 2, kind: input, shape index: {}]   ;;  %s2997_s3 = inlined_call_operand.vmem [shape: f32[1,512], index: 3, kind: input, shape index: {}]   ;;  %s2998_s4 = inlined_call_operand.vmem [shape: f32[144,64], index: 4, kind: output, shape index: {0}]   ;;  %s2999_s5 = inlined_call_operand.vmem [shape: s32[144,1], index: 5, kind: output, shape index: {1}]   ;;  %s3000_s6 = inlined_call_operand.hbm [shape: f32[3,1,512], index: 6, kind: output, shape index: {2}]   ;;  %s3001_s7 = inlined_call_operand.vmem [shape: f32[3,1,1], index: 7, kind: output, shape index: {3}]  }
   0x1   :  { %15 = vsyncpa [#allocation3 + $0x1], 0  ;;  %s2097_s24 = smov 0   ;;  %s2099_s25 = smov 0  }
   0x2   :  { %s2101_s26 = smov 0   ;;  %s2103_s27 = smov 0  }
   0x3 LB: > { %s2118_s28 = sadd.s32 4294967295, %s2050_s27   ;;  %s1610_s29 = sadd.s32 4294967294, %s2050_s27   ;;  %s2050_s27 = sphi %s2103_s27, %s3014_s27   ;;  %s2046_s26 = sphi %s2101_s26, %s3013_s26   ;;  %s2042_s25 = sphi %s2099_s25, %s3012_s25   ;;  %s2038_s24 = sphi %s2097_s24, %s3011_s24  }
   0x4   : > { %s2122_s30 = sadd.s32 1, %s2050_s27   ;;  %s169_s8 = sadd.s32 1, %s2046_s26 }
   0x5   : > { %s166_s9 = ssub.s32 %s2050_s27, %s2122_s30  ;;  %p179_p0 = scmp.ne.s32.totalorder %s2046_s26, %s2042_s25 }
   0x6   : > { %p167_p1 = scmp.eq.s32.totalorder %s166_s9, 0  ;;  %p180_p2 = scmp.eq.s32.totalorder %s2118_s28, 2 }
   0x7   : > { %p185_p3 = scmp.ne.s32.totalorder %s2042_s25, %s2038_s24  ;;  %p186_p4 = scmp.eq.s32.totalorder %s1610_s29, 2 }
   0x8   : > { %s2133_s10 = scalar_select %p167_p1, %s2046_s26, %s169_s8  }
   0x9   : > { %p2135_p5 = por %p180_p2, %p179_p0  ;;  %p2139_p6 = por %p186_p4, %p185_p3 }
   0xa   : > { %p1613_p7 = scmp.ge.s32.totalorder %s2050_s27, 1  ;;  %p248_p8 = scmp.lt.s32.totalorder %s2050_s27, 4 }
   0xc   : > { %p249_p9 = pnand %p1613_p7, %p248_p8 }
   0xd   : > { %v321_v0 = vld [vmem:[%s2996_s2 + $0x8] sm:$0xff] (!%p249_p9)  ;;  %v320_v2 = vld [vmem:[%s2996_s2] sm:$0xff] (!%p249_p9)  ;;  %s293_s19 = smul.u32 (!%p249_p9), 6, %s2118_s28  ;;  %v323_v5 = vld [vmem:[%s2996_s2 + $0x18] sm:$0xff] (!%p249_p9)  ;;  %v2052_v7 = vmov (!%p249_p9), 0.0   ;;  %vm352_vm0 = vcmask (!%p249_p9), 523264   ;;  %v599_v55 = vlaneseq (!%p249_p9) }
   0xe   : > { %252 = sbr.rel (%p249_p9) target bundleno = 1160 (0x488), region = 36  ;;  %v325_v1 = vld [vmem:[%s2996_s2 + $0x28] sm:$0xff] (!%p249_p9)  ;;  %v324_v4 = vld [vmem:[%s2996_s2 + $0x20] sm:$0xff] (!%p249_p9)  ;;  %v327_v6 = vld [vmem:[%s2996_s2 + $0x38] sm:$0xff] (!%p249_p9)  ;;  %435 = vmatprep.mubr.f32.mxu0 (!%p249_p9), %v2052_v7  ;;  %536 = vmatprep.mubr.f32.mxu1 (!%p249_p9), %v2052_v7 }
   0xf   : > { %v1817_v3 = vpack.c.bf16 (!%p249_p9), %v325_v1, %v321_v0  ;;  %v1819_v8 = vpack.c.bf16 (!%p249_p9), %v324_v4, %v320_v2  ;;  %v1833_v9 = vpack.c.bf16 (!%p249_p9), %v327_v6, %v323_v5  ;;  %v322_v10 = vld [vmem:[%s2996_s2 + $0x10] sm:$0xff] (!%p249_p9)  ;;  %v329_v12 = vld [vmem:[%s2996_s2 + $0x48] sm:$0xff] (!%p249_p9)  ;;  %p2177_p10 = scmp.lt.s32.totalorder (!%p249_p9), %s293_s19, 17  ;;  %v328_v15 = vld [vmem:[%s2996_s2 + $0x40] sm:$0xff] (!%p249_p9)  ;;  %v2291_v56 = vshrl.u32 (!%p249_p9), %v599_v55, 7  ;;  %s1178_s20 = smul.u32 (!%p249_p9), 48, %s2118_s28 }
  0x10   : > { %v326_v11 = vld [vmem:[%s2996_s2 + $0x30] sm:$0xff] (!%p249_p9)  ;;  %v333_v14 = vld [vmem:[%s2996_s2 + $0x68] sm:$0xff] (!%p249_p9)  ;;  %v332_v16 = vld [vmem:[%s2996_s2 + $0x60] sm:$0xff] (!%p249_p9) }
  0x11   : > { %1818 = vmatprep.subr.bf16.mxu0 (!%p249_p9), %v1817_v3  ;;  %v1835_v13 = vpack.c.bf16 (!%p249_p9), %v326_v11, %v322_v10  ;;  %1834 = vmatprep.subr.bf16.mxu1 (!%p249_p9), %v1833_v9  ;;  %v1821_v17 = vpack.c.bf16 (!%p249_p9), %v333_v14, %v329_v12  ;;  %v1823_v18 = vpack.c.bf16 (!%p249_p9), %v332_v16, %v328_v15  ;;  %v331_v19 = vld [vmem:[%s2996_s2 + $0x58] sm:$0xff] (!%p249_p9)  ;;  %v330_v21 = vld [vmem:[%s2996_s2 + $0x50] sm:$0xff] (!%p249_p9)  ;;  %v337_v24 = vld [vmem:[%s2996_s2 + $0x88] sm:$0xff] (!%p249_p9)  ;;  %v601_v57 = vsub.s32 (!%p249_p9), 0, %v2291_v56 }
  0x12   : > { %1820 = vmatpush1.bf16.msra.mxu0 (!%p249_p9), %v1819_v8  ;;  %v335_v20 = vld [vmem:[%s2996_s2 + $0x78] sm:$0xff] (!%p249_p9)  ;;  %v334_v23 = vld [vmem:[%s2996_s2 + $0x70] sm:$0xff] (!%p249_p9)  ;;  %v341_v25 = vld [vmem:[%s2996_s2 + $0xa8] sm:$0xff] (!%p249_p9)  ;;  %v605_v59 = vsub.s32 (!%p249_p9), 1, %v2291_v56  ;;  %v609_v60 = vsub.s32 (!%p249_p9), 2, %v2291_v56  ;;  %v613_v62 = vsub.s32 (!%p249_p9), 3, %v2291_v56 }
  0x13   : > { %1836 = vmatpush1.bf16.msra.mxu1 (!%p249_p9), %v1835_v13  ;;  %v1837_v22 = vpack.c.bf16 (!%p249_p9), %v335_v20, %v331_v19  ;;  %1822 = vmatprep.subr.bf16.mxu0 (!%p249_p9), %v1821_v17  ;;  %v1839_v26 = vpack.c.bf16 (!%p249_p9), %v334_v23, %v330_v21  ;;  %v1825_v27 = vpack.c.bf16 (!%p249_p9), %v341_v25, %v337_v24  ;;  %v336_v28 = vld [vmem:[%s2996_s2 + $0x80] sm:$0xff] (!%p249_p9)  ;;  %v339_v30 = vld [vmem:[%s2996_s2 + $0x98] sm:$0xff] (!%p249_p9)  ;;  %v338_v32 = vld [vmem:[%s2996_s2 + $0x90] sm:$0xff] (!%p249_p9) }
  0x14   : > { %v340_v29 = vld [vmem:[%s2996_s2 + $0xa0] sm:$0xff] (!%p249_p9)  ;;  %v343_v31 = vld [vmem:[%s2996_s2 + $0xb8] sm:$0xff] (!%p249_p9)  ;;  %v342_v33 = vld [vmem:[%s2996_s2 + $0xb0] sm:$0xff] (!%p249_p9) }
  0x15   : > { %s3016_s19 = smov (!%p2177_p10, %s293_s19), 17  ;;  %1838 = vmatprep.subr.bf16.mxu1 %v1837_v22  ;;  %v1827_v34 = vpack.c.bf16 %v340_v29, %v336_v28  ;;  %v1841_v35 = vpack.c.bf16 %v343_v31, %v339_v30  ;;  %v345_v36 = vld [vmem:[%s2996_s2 + $0xc8] sm:$0xff]  ;;  %v344_v38 = vld [vmem:[%s2996_s2 + $0xc0] sm:$0xff]  ;;  %v1843_v39 = vpack.c.bf16 %v342_v33, %v338_v32  ;;  %v347_v42 = vld [vmem:[%s2996_s2 + $0xd8] sm:$0xff] }
  0x16   : > { %1824 = vmatpush1.bf16.msra.mxu0 %v1823_v18  ;;  %v349_v37 = vld [vmem:[%s2996_s2 + $0xe8] sm:$0xff]  ;;  %v348_v41 = vld [vmem:[%s2996_s2 + $0xe0] sm:$0xff]  ;;  %v351_v43 = vld [vmem:[%s2996_s2 + $0xf8] sm:$0xff]  ;;  %s2254_s14 = sshll.u32 %s3016_s19, 3 }
  0x17   : > { %1840 = vmatpush1.bf16.msra.mxu1 %v1839_v26  ;;  %1826 = vmatprep.subr.bf16.mxu0 %v1825_v27  ;;  %v1829_v40 = vpack.c.bf16 %v349_v37, %v345_v36  ;;  %v1845_v44 = vpack.c.bf16 %v351_v43, %v347_v42  ;;  %v346_v45 = vld [vmem:[%s2996_s2 + $0xd0] sm:$0xff]  ;;  %v1831_v47 = vpack.c.bf16 %v348_v41, %v344_v38  ;;  %s2260_s17 = scalar_lea.vmem %s2994_s0, %s2254_s14  ;;  %v573_v58 = vld [vmem:[%s2997_s3] sm:$0xf]  ;;  %s2726_s19 = scalar_lea.vmem %s2999_s5, %s2254_s14 }
  0x18   : > { %1842 = vmatprep.subr.bf16.mxu1 %v1841_v35  ;;  %v350_v46 = vld [vmem:[%s2996_s2 + $0xf0] sm:$0xff]  ;;  %v314_v49 = vld [vmem:[%s2260_s17] sm:$0xff]  ;;  %v315_v50 = vld [vmem:[%s2260_s17 + $0x8] sm:$0xff]  ;;  %v2299_v61 = vrot.slane %v573_v58, %v601_v57  ;;  %v2302_v0 = vrot.slane %v573_v58, %v605_v59  ;;  %v2304_v1 = vrot.slane %v573_v58, %v609_v60  ;;  %v2309_v11 = vrot.slane %v573_v58, %v613_v62  ;;  %s2905_s23 = scalar_lea.vmem %s2998_s4, %s2254_s14  ;;  %s285_s14 = sand.u32 1, %s2042_s25  }
  0x19   : > { %v1847_v48 = vpack.c.bf16 %v350_v46, %v346_v45  ;;  %v316_v51 = vld [vmem:[%s2260_s17 + $0x10] sm:$0xff]  ;;  %v317_v52 = vld [vmem:[%s2260_s17 + $0x18] sm:$0xff]  ;;  %v318_v53 = vld [vmem:[%s2260_s17 + $0x20] sm:$0xff]  ;;  %s1614_s29 = sshll.u32 %s285_s14, 2  ;;  %s1454_s16 = scalar_lea.sflag [#allocation3], %s285_s14 }
  0x1a   : > { %1828 = vmatpush1.bf16.msra.mxu0 %v1827_v34  ;;  %v319_v54 = vld [vmem:[%s2260_s17 + $0x28] sm:$0xff]  ;;  %s287_s18 = scalar_lea.vmem [#allocation2], %s1614_s29 }
  0x1b   : > { %1844 = vmatpush1.bf16.msra.mxu1 %v1843_v39  ;;  %1830 = vmatprep.subr.bf16.mxu0 %v1829_v40  ;;  %s1479_s15 = sshll.u32 %s287_s18, 4  ;;  %s1480_s15 = int_to_ptr.vmem [resolvable:$true] %s1479_s15 }
  0x1c   : > { %1846 = vmatprep.subr.bf16.mxu1 %v1845_v44 }
  0x1e   : > { %1832 = vmatpush1.bf16.msra.mxu0 %v1831_v47 }
  0x1f   : > { %1848 = vmatpush1.bf16.msra.mxu1 %v1847_v48 }
  0x21   : > { %1618 = vmatmul.mubr.msk.f32.vlgmr.msra.gmra.mrb[0].mxu0 %vm352_vm0, %v314_v49 }
  0x22   : > { %1624 = vmatmul.mubr.msk.f32.vlgmr.msra.gmra.mrb[0].mxu1 %vm352_vm0, %v314_v49  ;;  %441 = vmatprep.mubr.f32.mxu0 %v2052_v7 }
  0x23   : > { %542 = vmatprep.mubr.f32.mxu1 %v2052_v7 }
  0x25   : > { %1619 = vmatmul.mubr.msk.f32.gmra.mrb[2].mxu0 %vm352_vm0, %v315_v50 }
  0x26   : > { %1625 = vmatmul.mubr.msk.f32.gmra.mrb[2].mxu1 %vm352_vm0, %v315_v50  ;;  %447 = vmatprep.mubr.f32.mxu0 %v2052_v7 }
  0x27   : > { %548 = vmatprep.mubr.f32.mxu1 %v2052_v7 }
  0x29   : > { %1620 = vmatmul.mubr.msk.f32.gmra.mrb[4].mxu0 %vm352_vm0, %v316_v51 }
  0x2a   : > { %1626 = vmatmul.mubr.msk.f32.gmra.mrb[4].mxu1 %vm352_vm0, %v316_v51  ;;  %453 = vmatprep.mubr.f32.mxu0 %v2052_v7 }
  0x2b   : > { %554 = vmatprep.mubr.f32.mxu1 %v2052_v7 }
  0x2d   : > { %1621 = vmatmul.mubr.msk.f32.gmra.mrb[6].mxu0 %vm352_vm0, %v317_v52 }
  0x2e   : > { %1627 = vmatmul.mubr.msk.f32.gmra.mrb[6].mxu1 %vm352_vm0, %v317_v52  ;;  %459 = vmatprep.mubr.f32.mxu0 %v2052_v7 }
  0x2f   : > { %560 = vmatprep.mubr.f32.mxu1 %v2052_v7 }
  0x31   : > { %1622 = vmatmul.mubr.msk.f32.gmra.mrb[8].mxu0 %vm352_vm0, %v318_v53 }
  0x32   : > { %1628 = vmatmul.mubr.msk.f32.gmra.mrb[8].mxu1 %vm352_vm0, %v318_v53  ;;  %465 = vmatprep.mubr.f32.mxu0 %v2052_v7 }
  0x33   : > { %566 = vmatprep.mubr.f32.mxu1 %v2052_v7 }
  0x35   : > { %1623 = vmatmul.mubr.msk.f32.gmra.mrb[10].mxu0 %vm352_vm0, %v319_v54 }
  0x36   : > { %1629 = vmatmul.mubr.msk.f32.gmra.mrb[10].mxu1 %vm352_vm0, %v319_v54 }
  0xf4   : > { %v437_v63 = vpop.f32.mrb[0].mxu0 }
  0xf5   : > { %v574_v2 = vmul.f32 2.0, %v437_v63  ;;  %v439_v3 = vpop.f32.mrb[1].mxu0  ;;  %v538_v4 = vpop.f32.mrb[0].mxu1 }
  0xf6   : > { %v575_v5 = vmul.f32 2.0, %v439_v3  ;;  %v576_v6 = vmul.f32 2.0, %v538_v4  ;;  %v540_v8 = vpop.f32.mrb[1].mxu1 }
  0xf7   : > { %v2307_v9 = vsub.f32 %v2299_v61, %v574_v2  ;;  %v577_v10 = vmul.f32 2.0, %v540_v8 }
  0xf8   : > { %v2312_v12 = vsub.f32 %v2302_v0, %v575_v5  ;;  %v2315_v13 = vsub.f32 %v2304_v1, %v576_v6  ;;  %v443_v14 = vpop.f32.mrb[2].mxu0 }
  0xf9   : > { %v578_v15 = vmul.f32 2.0, %v443_v14  ;;  %v445_v16 = vpop.f32.mrb[3].mxu0  ;;  %v544_v17 = vpop.f32.mrb[2].mxu1  ;;  %v2323_v23 = vsub.f32 %v2309_v11, %v577_v10 }
  0xfa   : > { %v579_v18 = vmul.f32 2.0, %v445_v16  ;;  %v580_v19 = vmul.f32 2.0, %v544_v17  ;;  %v546_v20 = vpop.f32.mrb[3].mxu1  ;;  %v643_v21 = vmin.f32 %v2307_v9, %v2312_v12 }
  0xfb   : > { %v2320_v22 = vsub.f32 %v2299_v61, %v578_v15  ;;  %v581_v26 = vmul.f32 2.0, %v546_v20 }
  0xfc   : > { %v2326_v24 = vsub.f32 %v2302_v0, %v579_v18  ;;  %v2329_v25 = vsub.f32 %v2304_v1, %v580_v19  ;;  %v449_v27 = vpop.f32.mrb[4].mxu0  ;;  %v644_v28 = vmin.f32 %v643_v21, %v2315_v13 }
  0xfd   : > { %v582_v29 = vmul.f32 2.0, %v449_v27  ;;  %v451_v30 = vpop.f32.mrb[5].mxu0  ;;  %v550_v31 = vpop.f32.mrb[4].mxu1  ;;  %v2339_v39 = vsub.f32 %v2309_v11, %v581_v26 }
  0xfe   : > { %v648_v32 = vmin.f32 %v2320_v22, %v2326_v24  ;;  %v583_v33 = vmul.f32 2.0, %v451_v30  ;;  %v584_v34 = vmul.f32 2.0, %v550_v31  ;;  %v552_v35 = vpop.f32.mrb[5].mxu1  ;;  %v645_v36 = vmin.f32 %v644_v28, %v2323_v23 }
  0xff   : > { %v2336_v37 = vsub.f32 %v2299_v61, %v582_v29  ;;  %v585_v38 = vmul.f32 2.0, %v552_v35 }
 0x100   : > { %v2342_v40 = vsub.f32 %v2302_v0, %v583_v33  ;;  %v2345_v41 = vsub.f32 %v2304_v1, %v584_v34  ;;  %646 = vmin.xlane.f32.xlu0 %v645_v36  ;;  %v455_v42 = vpop.f32.mrb[6].mxu0  ;;  %v649_v43 = vmin.f32 %v648_v32, %v2329_v25 }
 0x101   : > { %v586_v44 = vmul.f32 2.0, %v455_v42  ;;  %v457_v45 = vpop.f32.mrb[7].mxu0  ;;  %v556_v46 = vpop.f32.mrb[6].mxu1  ;;  %v2355_v53 = vsub.f32 %v2309_v11, %v585_v38 }
 0x102   : > { %v587_v47 = vmul.f32 2.0, %v457_v45  ;;  %v588_v48 = vmul.f32 2.0, %v556_v46  ;;  %v558_v49 = vpop.f32.mrb[7].mxu1  ;;  %v650_v50 = vmin.f32 %v649_v43, %v2339_v39  ;;  %v653_v51 = vmin.f32 %v2336_v37, %v2342_v40 }
 0x103   : > { %v2352_v52 = vsub.f32 %v2299_v61, %v586_v44  ;;  %v589_v58 = vmul.f32 2.0, %v558_v49 }
 0x104   : > { %v2358_v54 = vsub.f32 %v2302_v0, %v587_v47  ;;  %v2361_v57 = vsub.f32 %v2304_v1, %v588_v48  ;;  %651 = vmin.xlane.f32.xlu0 %v650_v50  ;;  %v461_v59 = vpop.f32.mrb[8].mxu0  ;;  %v654_v60 = vmin.f32 %v653_v51, %v2345_v41 }
 0x105   : > { %v590_v62 = vmul.f32 2.0, %v461_v59  ;;  %v463_v63 = vpop.f32.mrb[9].mxu0  ;;  %v562_v2 = vpop.f32.mrb[8].mxu1  ;;  %v2371_v15 = vsub.f32 %v2309_v11, %v589_v58 }
 0x106   : > { %v658_v3 = vmin.f32 %v2352_v52, %v2358_v54  ;;  %v591_v4 = vmul.f32 2.0, %v463_v63  ;;  %v592_v5 = vmul.f32 2.0, %v562_v2  ;;  %v564_v6 = vpop.f32.mrb[9].mxu1  ;;  %v655_v8 = vmin.f32 %v654_v60, %v2355_v53 }
 0x107   : > { %v2368_v10 = vsub.f32 %v2299_v61, %v590_v62  ;;  %v593_v14 = vmul.f32 2.0, %v564_v6 }
 0x108   : > { %v2374_v16 = vsub.f32 %v2302_v0, %v591_v4  ;;  %v2377_v17 = vsub.f32 %v2304_v1, %v592_v5  ;;  %656 = vmin.xlane.f32.xlu1 %v655_v8  ;;  %v467_v18 = vpop.f32.mrb[10].mxu0  ;;  %v659_v19 = vmin.f32 %v658_v3, %v2361_v57 }
 0x109   : > { %v594_v20 = vmul.f32 2.0, %v467_v18  ;;  %v469_v21 = vpop.f32.mrb[11].mxu0  ;;  %v568_v26 = vpop.f32.mrb[10].mxu1  ;;  %v2384_v32 = vsub.f32 %v2309_v11, %v593_v14 }
 0x10a   : > { %v663_v27 = vmin.f32 %v2368_v10, %v2374_v16  ;;  %v595_v28 = vmul.f32 2.0, %v469_v21  ;;  %v596_v29 = vmul.f32 2.0, %v568_v26  ;;  %v570_v30 = vpop.f32.mrb[11].mxu1  ;;  %v660_v31 = vmin.f32 %v659_v19, %v2371_v15 }
 0x10b   : > { %v2387_v33 = vsub.f32 %v2299_v61, %v594_v20  ;;  %v597_v36 = vmul.f32 2.0, %v570_v30 }
 0x10c   : > { %v2390_v34 = vsub.f32 %v2302_v0, %v595_v28  ;;  %v2393_v35 = vsub.f32 %v2304_v1, %v596_v29  ;;  %661 = vmin.xlane.f32.xlu1 %v660_v31  ;;  %v664_v38 = vmin.f32 %v663_v27, %v2377_v17  ;;  %v2405_v1 = vand.u32 127, %v599_v55 }
 0x10d   : > { %v2400_v44 = vsub.f32 %v2309_v11, %v597_v36 }
 0x10e   : > { %v668_v42 = vmin.f32 %v2387_v33, %v2390_v34  ;;  %v665_v43 = vmin.f32 %v664_v38, %v2384_v32  ;;  %v2408_v45 = vadd.s32 128, %v2405_v1  ;;  %v2411_v47 = vadd.s32 256, %v2405_v1 }
 0x10f   : > { %v2419_v49 = vadd.s32 384, %v2405_v1 }
 0x110   : > { %666 = vmin.xlane.f32.xlu0 %v665_v43  ;;  %v669_v61 = vmin.f32 %v668_v42, %v2393_v35 }
 0x112   : > { %v670_v0 = vmin.f32 %v669_v61, %v2400_v44 }
 0x114   : > { %671 = vmin.xlane.f32.xlu1 %v670_v0 }
 0x18d   : > { %v647_v46 = vpop.xlane.xlu0 %646 }
 0x18e   : > { %vm678_vm1 = vcmp.le.f32.partialorder %v2307_v9, %v647_v46  ;;  %vm679_vm2 = vcmp.le.f32.partialorder %v2312_v12, %v647_v46  ;;  %vm680_vm3 = vcmp.le.f32.partialorder %v2315_v13, %v647_v46  ;;  %vm681_vm5 = vcmp.le.f32.partialorder %v2323_v23, %v647_v46 }
 0x18f   : > { %v702_v11 = vsel %vm678_vm1, %v2405_v1, 512  ;;  %v703_v48 = vsel %vm679_vm2, %v2408_v45, 512  ;;  %v704_v58 = vsel %vm680_vm3, %v2411_v47, 512  ;;  %v705_v13 = vsel %vm681_vm5, %v2419_v49, 512 }
 0x190   : > { %vm726_vm4 = vcmp.lt.s32.totalorder %v702_v11, %v703_v48 }
 0x191   : > { %v652_v50 = vpop.xlane.xlu0 %651  ;;  %v727_v51 = vsel %vm726_vm4, %v702_v11, %v703_v48 }
 0x192   : > { %vm682_vm6 = vcmp.le.f32.partialorder %v2320_v22, %v652_v50  ;;  %vm683_vm7 = vcmp.le.f32.partialorder %v2326_v24, %v652_v50  ;;  %vm684_vm8 = vcmp.le.f32.partialorder %v2329_v25, %v652_v50  ;;  %vm728_vm9 = vcmp.lt.s32.totalorder %v727_v51, %v704_v58 }
 0x193   : > { %v706_v9 = vsel %vm682_vm6, %v2405_v1, 512  ;;  %v707_v12 = vsel %vm683_vm7, %v2408_v45, 512  ;;  %v729_v59 = vsel %vm728_vm9, %v727_v51, %v704_v58  ;;  %vm685_vm12 = vcmp.le.f32.partialorder %v2339_v39, %v652_v50  ;;  %v935_v51 = vld [vmem:[%s2995_s1 + $0x88] sm:$0xff]  ;;  %v966_v58 = vld [vmem:[%s2995_s1 + $0x180] sm:$0xff] }
 0x194   : > { %vm746_vm10 = vcmp.lt.s32.totalorder %v706_v9, %v707_v12  ;;  %vm730_vm11 = vcmp.lt.s32.totalorder %v729_v59, %v705_v13  ;;  %v708_v22 = vsel %vm684_vm8, %v2411_v47, 512  ;;  %v709_v2 = vsel %vm685_vm12, %v2419_v49, 512 }
 0x195   : > { %v657_v23 = vpop.xlane.xlu1 %656  ;;  %v747_v60 = vsel %vm746_vm10, %v706_v9, %v707_v12  ;;  %v2436_v62 = vsel %vm730_vm11, %v729_v59, %v705_v13  ;;  %v967_v12 = vld [vmem:[%s2995_s1 + $0x188] sm:$0xff]  ;;  %v918_v13 = vld [vmem:[%s2995_s1] sm:$0xff] }
 0x196   : > { %vm686_vm13 = vcmp.le.f32.partialorder %v2336_v37, %v657_v23  ;;  %vm687_vm14 = vcmp.le.f32.partialorder %v2342_v40, %v657_v23  ;;  %vm688_vm15 = vcmp.le.f32.partialorder %v2345_v41, %v657_v23  ;;  %v733_v63 = vshra.s32 %v2436_v62, 16  ;;  %v919_v59 = vld [vmem:[%s2995_s1 + $0x8] sm:$0xff] }
 0x197   : > { %v710_v24 = vsel %vm686_vm13, %v2405_v1, 512  ;;  %v711_v25 = vsel %vm687_vm14, %v2408_v45, 512  ;;  %vm748_vm2 = vcmp.lt.s32.totalorder %v747_v60, %v708_v22  ;;  %vm689_vm3 = vcmp.le.f32.partialorder %v2355_v53, %v657_v23 }
 0x198   : > { %vm766_vm1 = vcmp.lt.s32.totalorder %v710_v24, %v711_v25  ;;  %v749_v37 = vsel %vm748_vm2, %v747_v60, %v708_v22  ;;  %v712_v40 = vsel %vm688_vm15, %v2411_v47, 512  ;;  %v2448_v53 = vcvt.s32.f32 %v733_v63  ;;  %v950_v22 = vld [vmem:[%s2995_s1 + $0x100] sm:$0xff] }
 0x199   : > { %v662_v39 = vpop.xlane.xlu1 %661  ;;  %v767_v3 = vsel %vm766_vm1, %v710_v24, %v711_v25  ;;  %vm750_vm9 = vcmp.lt.s32.totalorder %v749_v37, %v709_v2  ;;  %v713_v5 = vsel %vm689_vm3, %v2419_v49, 512  ;;  %v1881_v23 = vpack.c.bf16 %v967_v12, %v966_v58  ;;  %v951_v24 = vld [vmem:[%s2995_s1 + $0x108] sm:$0xff]  ;;  %v936_v25 = vld [vmem:[%s2995_s1 + $0x90] sm:$0xff] }
 0x19a   : > { %vm690_vm4 = vcmp.le.f32.partialorder %v2352_v52, %v662_v39  ;;  %vm691_vm5 = vcmp.le.f32.partialorder %v2358_v54, %v662_v39  ;;  %vm692_vm6 = vcmp.le.f32.partialorder %v2361_v57, %v662_v39  ;;  %vm693_vm7 = vcmp.le.f32.partialorder %v2371_v15, %v662_v39  ;;  %736 = vmin.xlane.f32.xlu0 %v2448_v53  ;;  %v937_v39 = vld [vmem:[%s2995_s1 + $0x98] sm:$0xff]  ;;  %v943_v58 = vld [vmem:[%s2995_s1 + $0xc8] sm:$0xff] }
 0x19b   : > { %v714_v41 = vsel %vm690_vm4, %v2405_v1, 512  ;;  %v715_v4 = vsel %vm691_vm5, %v2408_v45, 512  ;;  %vm768_vm10 = vcmp.lt.s32.totalorder %v767_v3, %v712_v40  ;;  %v716_v6 = vsel %vm692_vm6, %v2411_v47, 512  ;;  %1882 = vmatprep.subr.bf16.mxu1 %v1881_v23  ;;  %v975_v12 = vld [vmem:[%s2995_s1 + $0x1c8] sm:$0xff] }
 0x19c   : > { %vm786_vm8 = vcmp.lt.s32.totalorder %v714_v41, %v715_v4  ;;  %v2453_v54 = vsel %vm750_vm9, %v749_v37, %v709_v2  ;;  %v769_v57 = vsel %vm768_vm10, %v767_v3, %v712_v40  ;;  %v717_v14 = vsel %vm693_vm7, %v2419_v49, 512  ;;  %v968_v2 = vld [vmem:[%s2995_s1 + $0x190] sm:$0xff]  ;;  %v969_v37 = vld [vmem:[%s2995_s1 + $0x198] sm:$0xff] }
 0x19d   : > { %v667_v52 = vpop.xlane.xlu0 %666  ;;  %v787_v8 = vsel %vm786_vm8, %v714_v41, %v715_v4  ;;  %v753_v20 = vshra.s32 %v2453_v54, 16  ;;  %vm770_vm1 = vcmp.lt.s32.totalorder %v769_v57, %v713_v5  ;;  %v1851_v60 = vpack.c.bf16 %v919_v59, %v918_v13  ;;  %v920_v41 = vld [vmem:[%s2995_s1 + $0x10] sm:$0xff]  ;;  %v921_v4 = vld [vmem:[%s2995_s1 + $0x18] sm:$0xff] }
 0x19e   : > { %vm694_vm11 = vcmp.le.f32.partialorder %v2368_v10, %v667_v52  ;;  %vm695_vm12 = vcmp.le.f32.partialorder %v2374_v16, %v667_v52  ;;  %vm696_vm13 = vcmp.le.f32.partialorder %v2377_v17, %v667_v52  ;;  %vm697_vm14 = vcmp.le.f32.partialorder %v2384_v32, %v667_v52  ;;  %v953_v52 = vld [vmem:[%s2995_s1 + $0x118] sm:$0xff] }
 0x19f   : > { %v718_v18 = vsel %vm694_vm11, %v2405_v1, 512  ;;  %v719_v19 = vsel %vm695_vm12, %v2408_v45, 512  ;;  %v720_v21 = vsel %vm696_vm13, %v2411_v47, 512  ;;  %vm788_vm2 = vcmp.lt.s32.totalorder %v787_v8, %v716_v6 }
 0x1a0   : > { %vm806_vm15 = vcmp.lt.s32.totalorder %v718_v18, %v719_v19  ;;  %v2466_v10 = vcvt.s32.f32 %v753_v20  ;;  %v2468_v17 = vsel %vm770_vm1, %v769_v57, %v713_v5  ;;  %v789_v15 = vsel %vm788_vm2, %v787_v8, %v716_v6  ;;  %v952_v5 = vld [vmem:[%s2995_s1 + $0x110] sm:$0xff]  ;;  %v938_v57 = vld [vmem:[%s2995_s1 + $0xa0] sm:$0xff]  ;;  %v939_v8 = vld [vmem:[%s2995_s1 + $0xa8] sm:$0xff] }
 0x1a1   : > { %v672_v16 = vpop.xlane.xlu1 %671  ;;  %v807_v26 = vsel %vm806_vm15, %v718_v18, %v719_v19  ;;  %v721_v27 = vsel %vm697_vm14, %v2419_v49, 512  ;;  %v773_v30 = vshra.s32 %v2468_v17, 16  ;;  %vm790_vm8 = vcmp.lt.s32.totalorder %v789_v15, %v717_v14  ;;  %v970_v19 = vld [vmem:[%s2995_s1 + $0x1a0] sm:$0xff]  ;;  %v971_v20 = vld [vmem:[%s2995_s1 + $0x1a8] sm:$0xff] }
 0x1a2   : > { %vm698_vm3 = vcmp.le.f32.partialorder %v2387_v33, %v672_v16  ;;  %vm699_vm4 = vcmp.le.f32.partialorder %v2390_v34, %v672_v16  ;;  %vm700_vm5 = vcmp.le.f32.partialorder %v2393_v35, %v672_v16  ;;  %756 = vmin.xlane.f32.xlu1 %v2466_v10  ;;  %vm701_vm6 = vcmp.le.f32.partialorder %v2400_v44, %v672_v16  ;;  %v934_v44 = vld [vmem:[%s2995_s1 + $0x80] sm:$0xff] }
 0x1a3   : > { %v722_v28 = vsel %vm698_vm3, %v2405_v1, 512  ;;  %v723_v29 = vsel %vm699_vm4, %v2408_v45, 512  ;;  %v724_v31 = vsel %vm700_vm5, %v2411_v47, 512  ;;  %vm808_vm9 = vcmp.lt.s32.totalorder %v807_v26, %v720_v21 }
 0x1a4   : > { %vm826_vm7 = vcmp.lt.s32.totalorder %v722_v28, %v723_v29  ;;  %v2482_v33 = vcvt.s32.f32 %v773_v30  ;;  %v2484_v34 = vsel %vm790_vm8, %v789_v15, %v717_v14  ;;  %v809_v32 = vsel %vm808_vm9, %v807_v26, %v720_v21  ;;  %v922_v21 = vld [vmem:[%s2995_s1 + $0x20] sm:$0xff]  ;;  %v923_v15 = vld [vmem:[%s2995_s1 + $0x28] sm:$0xff]  ;;  %v941_v30 = vld [vmem:[%s2995_s1 + $0xb8] sm:$0xff] }
 0x1a5   : > { %v827_v35 = vsel %vm826_vm7, %v722_v28, %v723_v29  ;;  %v793_v36 = vshra.s32 %v2484_v34, 16  ;;  %vm810_vm10 = vcmp.lt.s32.totalorder %v809_v32, %v721_v27  ;;  %v725_v42 = vsel %vm701_vm6, %v2419_v49, 512  ;;  %v954_v26 = vld [vmem:[%s2995_s1 + $0x120] sm:$0xff]  ;;  %v940_v29 = vld [vmem:[%s2995_s1 + $0xb0] sm:$0xff] }
 0x1a6   : > { %vm828_vm11 = vcmp.lt.s32.totalorder %v827_v35, %v724_v31  ;;  %776 = vmin.xlane.f32.xlu0 %v2482_v33  ;;  %v2488_v38 = vsel %vm810_vm10, %v809_v32, %v721_v27  ;;  %v1849_v9 = vpack.c.bf16 %v935_v51, %v934_v44  ;;  %v1883_v63 = vpack.c.bf16 %v951_v24, %v950_v22  ;;  %v955_v27 = vld [vmem:[%s2995_s1 + $0x128] sm:$0xff]  ;;  %v957_v44 = vld [vmem:[%s2995_s1 + $0x138] sm:$0xff]  ;;  %v942_v51 = vld [vmem:[%s2995_s1 + $0xc0] sm:$0xff] }
 0x1a7   : > { %v829_v43 = vsel %vm828_vm11, %v827_v35, %v724_v31  ;;  %v2493_v61 = vcvt.s32.f32 %v793_v36  ;;  %v813_v0 = vshra.s32 %v2488_v38, 16  ;;  %v1853_v3 = vpack.c.bf16 %v937_v39, %v936_v25  ;;  %v972_v31 = vld [vmem:[%s2995_s1 + $0x1b0] sm:$0xff]  ;;  %v973_v36 = vld [vmem:[%s2995_s1 + $0x1b8] sm:$0xff]  ;;  %v927_v22 = vld [vmem:[%s2995_s1 + $0x48] sm:$0xff] }
 0x1a8   : > { %vm830_vm12 = vcmp.lt.s32.totalorder %v829_v43, %v725_v42  ;;  %1850 = vmatprep.subr.bf16.mxu0 %v1849_v9  ;;  %v1885_v40 = vpack.c.bf16 %v969_v37, %v968_v2  ;;  %1884 = vmatpush3.bf16.msra.mxu1 %v1883_v63  ;;  %v1855_v6 = vpack.c.bf16 %v921_v4, %v920_v41  ;;  %v974_v9 = vld [vmem:[%s2995_s1 + $0x1c0] sm:$0xff]  ;;  %v959_v63 = vld [vmem:[%s2995_s1 + $0x148] sm:$0xff]  ;;  %v944_v39 = vld [vmem:[%s2995_s1 + $0xd0] sm:$0xff]  ;;  %vm1430_vm4 = vcmask 7168  }
 0x1a9   : > { %v2496_v46 = vsel %vm830_vm12, %v829_v43, %v725_v42  ;;  %796 = vmin.xlane.f32.xlu1 %v2493_v61  ;;  %v2499_v11 = vcvt.s32.f32 %v813_v0  ;;  %1852 = vmatpush3.bf16.msra.mxu0 %v1851_v60  ;;  %v1887_v14 = vpack.c.bf16 %v953_v52, %v952_v5  ;;  %v1857_v18 = vpack.c.bf16 %v939_v8, %v938_v57  ;;  %v924_v42 = vld [vmem:[%s2995_s1 + $0x30] sm:$0xff]  ;;  %v925_v43 = vld [vmem:[%s2995_s1 + $0x38] sm:$0xff]  ;;  %v926_v60 = vld [vmem:[%s2995_s1 + $0x40] sm:$0xff] }
 0x1aa   : > { %v833_v48 = vshra.s32 %v2496_v46, 16  ;;  %1854 = vmatprep.subr.bf16.mxu0 %v1853_v3  ;;  %1886 = vmatprep.subr.bf16.mxu1 %v1885_v40  ;;  %v1889_v16 = vpack.c.bf16 %v971_v20, %v970_v19  ;;  %v1859_v28 = vpack.c.bf16 %v923_v15, %v922_v21  ;;  %v1891_v32 = vpack.c.bf16 %v955_v27, %v954_v26  ;;  %v958_v24 = vld [vmem:[%s2995_s1 + $0x140] sm:$0xff]  ;;  %v945_v2 = vld [vmem:[%s2995_s1 + $0xd8] sm:$0xff]  ;;  %v976_v37 = vld [vmem:[%s2995_s1 + $0x1d0] sm:$0xff] }
 0x1ab   : > { %816 = vmin.xlane.f32.xlu0 %v2499_v11  ;;  %v1861_v35 = vpack.c.bf16 %v941_v30, %v940_v29  ;;  %v1893_v0 = vpack.c.bf16 %v973_v36, %v972_v31  ;;  %v1863_v13 = vpack.c.bf16 %v925_v43, %v924_v42  ;;  %v1865_v23 = vpack.c.bf16 %v943_v58, %v942_v51  ;;  %v977_v3 = vld [vmem:[%s2995_s1 + $0x1d8] sm:$0xff]  ;;  %v928_v5 = vld [vmem:[%s2995_s1 + $0x50] sm:$0xff]  ;;  %v978_v19 = vld [vmem:[%s2995_s1 + $0x1e0] sm:$0xff] }
 0x1ac   : > { %v2503_v50 = vcvt.s32.f32 %v833_v48  ;;  %1888 = vmatpush3.bf16.msra.mxu1 %v1887_v14  ;;  %v956_v48 = vld [vmem:[%s2995_s1 + $0x130] sm:$0xff]  ;;  %v1897_v25 = vpack.c.bf16 %v975_v12, %v974_v9  ;;  %v1867_v40 = vpack.c.bf16 %v927_v22, %v926_v60  ;;  %v1899_v41 = vpack.c.bf16 %v959_v63, %v958_v24  ;;  %v961_v8 = vld [vmem:[%s2995_s1 + $0x158] sm:$0xff]  ;;  %v946_v14 = vld [vmem:[%s2995_s1 + $0xe0] sm:$0xff] }
 0x1ad   : > { %1856 = vmatpush3.bf16.msra.mxu0 %v1855_v6  ;;  %1890 = vmatprep.subr.bf16.mxu1 %v1889_v16  ;;  %v1895_v59 = vpack.c.bf16 %v957_v44, %v956_v48  ;;  %v1869_v4 = vpack.c.bf16 %v945_v2, %v944_v39  ;;  %v929_v6 = vld [vmem:[%s2995_s1 + $0x58] sm:$0xff]  ;;  %v960_v52 = vld [vmem:[%s2995_s1 + $0x150] sm:$0xff]  ;;  %v1901_v57 = vpack.c.bf16 %v977_v3, %v976_v37  ;;  %v979_v20 = vld [vmem:[%s2995_s1 + $0x1e8] sm:$0xff]  ;;  %v772_v51 = vand.u32 65535, %v2468_v17 }
 0x1ae   : > { %836 = vmin.xlane.f32.xlu1 %v2503_v50  ;;  %1858 = vmatprep.subr.bf16.mxu0 %v1857_v18  ;;  %v947_v18 = vld [vmem:[%s2995_s1 + $0xe8] sm:$0xff]  ;;  %v1871_v21 = vpack.c.bf16 %v929_v6, %v928_v5  ;;  %v1903_v16 = vpack.c.bf16 %v961_v8, %v960_v52  ;;  %v930_v26 = vld [vmem:[%s2995_s1 + $0x60] sm:$0xff]  ;;  %v832_v17 = vand.u32 65535, %v2496_v46  ;;  %v949_v22 = vld [vmem:[%s2995_s1 + $0xf8] sm:$0xff] }
 0x1af   : > { %v1873_v15 = vpack.c.bf16 %v947_v18, %v946_v14  ;;  %v931_v27 = vld [vmem:[%s2995_s1 + $0x68] sm:$0xff]  ;;  %v962_v29 = vld [vmem:[%s2995_s1 + $0x160] sm:$0xff]  ;;  %v774_v12 = vcvt.s32.f32 %v772_v51  ;;  %v933_v63 = vld [vmem:[%s2995_s1 + $0x78] sm:$0xff]  ;;  %v2053_v18 = vmov 1.0  }
 0x1b0   : > { %1892 = vmatpush3.bf16.msra.mxu1 %v1891_v32  ;;  %v963_v30 = vld [vmem:[%s2995_s1 + $0x168] sm:$0xff]  ;;  %v1875_v31 = vpack.c.bf16 %v931_v27, %v930_v26  ;;  %v834_v60 = vcvt.s32.f32 %v832_v17  ;;  %v964_v37 = vld [vmem:[%s2995_s1 + $0x170] sm:$0xff]  ;;  %v965_v3 = vld [vmem:[%s2995_s1 + $0x178] sm:$0xff] }
 0x1b1   : > { %1860 = vmatpush3.bf16.msra.mxu0 %v1859_v28  ;;  %1894 = vmatprep.subr.bf16.mxu1 %v1893_v0  ;;  %v1905_v28 = vpack.c.bf16 %v979_v20, %v978_v19  ;;  %v1907_v32 = vpack.c.bf16 %v963_v30, %v962_v29  ;;  %v752_v0 = vand.u32 65535, %v2453_v54 }
 0x1b2   : > { %1862 = vmatprep.subr.bf16.mxu0 %v1861_v35  ;;  %v732_v35 = vand.u32 65535, %v2436_v62  ;;  %v792_v62 = vand.u32 65535, %v2484_v34 }
 0x1b3   : > { %v754_v44 = vcvt.s32.f32 %v752_v0 }
 0x1b4   : > { %1896 = vmatpush3.bf16.msra.mxu1 %v1895_v59  ;;  %v734_v42 = vcvt.s32.f32 %v732_v35  ;;  %v794_v59 = vcvt.s32.f32 %v792_v62 }
 0x1b5   : > { %1864 = vmatpush3.bf16.msra.mxu0 %v1863_v13  ;;  %1898 = vmatprep.subr.bf16.mxu1 %v1897_v25  ;;  %v981_v25 = vld [vmem:[%s2995_s1 + $0x1f8] sm:$0xff] }
 0x1b6   : > { %1866 = vmatprep.subr.bf16.mxu0 %v1865_v23 }
 0x1b8   : > { %1900 = vmatpush3.bf16.msra.mxu1 %v1899_v41 }
 0x1b9   : > { %1868 = vmatpush3.bf16.msra.mxu0 %v1867_v40  ;;  %1902 = vmatprep.subr.bf16.mxu1 %v1901_v57  ;;  %v1911_v40 = vpack.c.bf16 %v965_v3, %v964_v37  ;;  %v1182_v37 = vadd.s32 16, %v2291_v56 }
 0x1ba   : > { %1870 = vmatprep.subr.bf16.mxu0 %v1869_v4 }
 0x1bc   : > { %1904 = vmatpush3.bf16.msra.mxu1 %v1903_v16 }
 0x1bd   : > { %1872 = vmatpush3.bf16.msra.mxu0 %v1871_v21  ;;  %1906 = vmatprep.subr.bf16.mxu1 %v1905_v28 }
 0x1be   : > { %1874 = vmatprep.subr.bf16.mxu0 %v1873_v15 }
 0x1c0   : > { %1908 = vmatpush3.bf16.msra.mxu1 %v1907_v32 }
 0x1c1   : > { %1876 = vmatpush3.bf16.msra.mxu0 %v1875_v31 }
 0x227   : > { %v737_v36 = vpop.xlane.xlu0 %736 }
 0x228   : > { %vm738_vm13 = vcmp.eq.f32.partialorder %v2448_v53, %v737_v36  ;;  %v812_v53 = vand.u32 65535, %v2488_v38  ;;  %v743_v41 = vcvt.f32.s32 %v737_v36 }
 0x229   : > { %v739_v43 = vsel %vm738_vm13, %v734_v42, inf }
 0x22a   : > { %740 = vmin.xlane.f32.xlu0 %v739_v43  ;;  %v814_v34 = vcvt.s32.f32 %v812_v53  ;;  %v744_v5 = vshll.u32 %v743_v41, 16  ;;  %v2054_v43 = vmov 1.0|1.0  }
 0x22f   : > { %v2677_v48 = vpop.xlane.xlu1 %756 }
 0x230   : > { %vm758_vm14 = vcmp.eq.f32.partialorder %v2466_v10, %v2677_v48  ;;  %v763_v52 = vcvt.f32.s32 %v2677_v48 }
 0x231   : > { %v759_v58 = vsel %vm758_vm14, %v754_v44, inf }
 0x232   : > { %760 = vmin.xlane.f32.xlu1 %v759_v58  ;;  %v764_v19 = vshll.u32 %v763_v52, 16 }
 0x233   : > { %v777_v9 = vpop.xlane.xlu0 %776 }
 0x234   : > { %vm778_vm15 = vcmp.eq.f32.partialorder %v2482_v33, %v777_v9  ;;  %v783_v8 = vcvt.f32.s32 %v777_v9 }
 0x235   : > { %v779_v54 = vsel %vm778_vm15, %v774_v12, inf }
 0x236   : > { %780 = vmin.xlane.f32.xlu0 %v779_v54  ;;  %v2685_v13 = vpop.xlane.xlu1 %796  ;;  %v784_v16 = vshll.u32 %v783_v8, 16  ;;  %v1183_v8 = vadd.s32 24, %v2291_v56  ;;  %v1185_v54 = vadd.s32 40, %v2291_v56 }
 0x237   : > { %vm798_vm1 = vcmp.eq.f32.partialorder %v2493_v61, %v2685_v13  ;;  %v948_v61 = vld [vmem:[%s2995_s1 + $0xf0] sm:$0xff]  ;;  %v803_v15 = vcvt.f32.s32 %v2685_v13 }
 0x238   : > { %v799_v10 = vsel %vm798_vm1, %v794_v59, inf  ;;  %v2690_v23 = vpop.xlane.xlu0 %816  ;;  %v1877_v24 = vpack.c.bf16 %v949_v22, %v948_v61 }
 0x239   : > { %800 = vmin.xlane.f32.xlu1 %v799_v10  ;;  %vm818_vm2 = vcmp.eq.f32.partialorder %v2499_v11, %v2690_v23  ;;  %v980_v11 = vld [vmem:[%s2995_s1 + $0x1f0] sm:$0xff]  ;;  %v823_v28 = vcvt.f32.s32 %v2690_v23  ;;  %v804_v36 = vshll.u32 %v803_v15, 16  ;;  %v1184_v15 = vadd.s32 32, %v2291_v56 }
 0x23a   : > { %v819_v33 = vsel %vm818_vm2, %v814_v34, inf  ;;  %v1909_v39 = vpack.c.bf16 %v981_v25, %v980_v11  ;;  %1878 = vmatprep.subr.bf16.mxu0 %v1877_v24 }
 0x23b   : > { %v2694_v38 = vpop.xlane.xlu1 %836  ;;  %820 = vmin.xlane.f32.xlu0 %v819_v33  ;;  %v824_v48 = vshll.u32 %v823_v28, 16 }
 0x23c   : > { %vm838_vm3 = vcmp.eq.f32.partialorder %v2503_v50, %v2694_v38  ;;  %v932_v50 = vld [vmem:[%s2995_s1 + $0x70] sm:$0xff]  ;;  %1910 = vmatprep.subr.bf16.mxu1 %v1909_v39  ;;  %v843_v30 = vcvt.f32.s32 %v2694_v38  ;;  %v1181_v38 = vadd.s32 8, %v2291_v56 }
 0x23d   : > { %v839_v46 = vsel %vm838_vm3, %v834_v60, inf  ;;  %v1879_v2 = vpack.c.bf16 %v933_v63, %v932_v50  ;;  %1912 = vmatpush3.bf16.msra.mxu1 %v1911_v40  ;;  %v1982_v60 = vld [vmem:[%s2260_s17] sm:$0xff] }
 0x23e   : > { %840 = vmin.xlane.f32.xlu1 %v839_v46  ;;  %v844_v58 = vshll.u32 %v843_v30, 16 }
 0x23f   : > { %1880 = vmatpush3.bf16.msra.mxu0 %v1879_v2 }
 0x2b7   : > { %v741_v4 = vpop.xlane.xlu0 %740 }
 0x2b8   : > { %v742_v6 = vcvt.f32.s32 %v741_v4  ;;  %v1983_v4 = vld [vmem:[%s2260_s17 + $0x8] sm:$0xff] }
 0x2ba   : > { %v745_v57 = vadd.s32 %v744_v5, %v742_v6 }
 0x2bc   : > { %1431 = vst.msk [vmem:[%s2726_s19] sm:$0xff] %vm1430_vm4, %v745_v57  ;;  %vm847_vm5 = vcmp.eq.s32.totalorder %v2408_v45, %v745_v57  ;;  %vm849_vm6 = vcmp.eq.s32.totalorder %v2419_v49, %v745_v57  ;;  %vm846_vm7 = vcmp.eq.s32.totalorder %v2405_v1, %v745_v57  ;;  %vm848_vm8 = vcmp.eq.s32.totalorder %v2411_v47, %v745_v57 }
 0x2bd   : > { %1654 = vmatprep.mubr.msk.f32.mxu0 %vm847_vm5, %v2053_v18  ;;  %1666 = vmatprep.mubr.msk.f32.mxu1 %vm849_vm6, %v2053_v18 }
 0x2be   : > { %1655 = vmatmul.mubr.msk.f32.vlgmr.msra.gmra.mrb[12].mxu0 %vm846_vm7, %v2053_v18  ;;  %1667 = vmatmul.mubr.msk.f32.vlgmr.msra.gmra.mrb[12].mxu1 %vm848_vm8, %v2053_v18 }
 0x2bf   : > { %v761_v14 = vpop.xlane.xlu1 %760 }
 0x2c0   : > { %v762_v20 = vcvt.f32.s32 %v761_v14 }
 0x2c2   : > { %v765_v21 = vadd.s32 %v764_v19, %v762_v20 }
 0x2c3   : > { %v781_v26 = vpop.xlane.xlu0 %780 }
 0x2c4   : > { %1432 = vst.msk [vmem:[%s2726_s19 + $0x8] sm:$0xff] %vm1430_vm4, %v765_v21  ;;  %v782_v27 = vcvt.f32.s32 %v781_v26  ;;  %vm851_vm9 = vcmp.eq.s32.totalorder %v2408_v45, %v765_v21  ;;  %vm853_vm10 = vcmp.eq.s32.totalorder %v2419_v49, %v765_v21  ;;  %vm850_vm11 = vcmp.eq.s32.totalorder %v2405_v1, %v765_v21 }
 0x2c5   : > { %1656 = vmatprep.mubr.msk.f32.mxu0 %vm851_vm9, %v2053_v18  ;;  %1668 = vmatprep.mubr.msk.f32.mxu1 %vm853_vm10, %v2053_v18  ;;  %vm2762_vm12 = vmpackc.low %vm850_vm11, %vm846_vm7  ;;  %vm852_vm13 = vcmp.eq.s32.totalorder %v2411_v47, %v765_v21 }
 0x2c6   : > { %v785_v31 = vadd.s32 %v784_v16, %v782_v27  ;;  %1657 = vmatmul.mubr.msk.f32.gmra.mrb[14].mxu0 %vm850_vm11, %v2053_v18  ;;  %1669 = vmatmul.mubr.msk.f32.gmra.mrb[14].mxu1 %vm852_vm13, %v2053_v18  ;;  %vm2772_vm14 = vmpackc.low %vm852_vm13, %vm848_vm8  ;;  %v801_v35 = vpop.xlane.xlu1 %800 }
 0x2c7   : > { %vm1913_vm15 = vmpackc.low %vm851_vm9, %vm847_vm5  ;;  %v802_v42 = vcvt.f32.s32 %v801_v35 }
 0x2c8   : > { %1433 = vst.msk [vmem:[%s2726_s19 + $0x10] sm:$0xff] %vm1430_vm4, %v785_v31  ;;  %1914 = vmatprep.subr.msk.bf16.mxu0 %vm1913_vm15, %v2054_v43  ;;  %vm1925_vm1 = vmpackc.low %vm853_vm10, %vm849_vm6  ;;  %vm855_vm2 = vcmp.eq.s32.totalorder %v2408_v45, %v785_v31  ;;  %vm857_vm3 = vcmp.eq.s32.totalorder %v2419_v49, %v785_v31  ;;  %vm854_vm7 = vcmp.eq.s32.totalorder %v2405_v1, %v785_v31  ;;  %v821_v0 = vpop.xlane.xlu0 %820 }
 0x2c9   : > { %1926 = vmatprep.subr.msk.bf16.mxu1 %vm1925_vm1, %v2054_v43  ;;  %1916 = vmatpush1.bf16.msk.msra.mxu0 %vm2762_vm12, %v2054_v43  ;;  %v805_v44 = vadd.s32 %v804_v36, %v802_v42  ;;  %vm856_vm5 = vcmp.eq.s32.totalorder %v2411_v47, %v785_v31  ;;  %v822_v51 = vcvt.f32.s32 %v821_v0  ;;  %v1984_v42 = vld [vmem:[%s2260_s17 + $0x10] sm:$0xff] }
 0x2ca   : > { %1928 = vmatpush1.bf16.msk.msra.mxu1 %vm2772_vm14, %v2054_v43  ;;  %1658 = vmatprep.mubr.msk.f32.mxu0 %vm855_vm2, %v2053_v18 }
 0x2cb   : > { %v841_v62 = vpop.xlane.xlu1 %840  ;;  %1434 = vst.msk [vmem:[%s2726_s19 + $0x18] sm:$0xff] %vm1430_vm4, %v805_v44  ;;  %1670 = vmatprep.mubr.msk.f32.mxu1 %vm857_vm3, %v2053_v18  ;;  %1659 = vmatmul.mubr.msk.f32.gmra.mrb[16].mxu0 %vm854_vm7, %v2053_v18  ;;  %v825_v9 = vadd.s32 %v824_v48, %v822_v51  ;;  %vm859_vm6 = vcmp.eq.s32.totalorder %v2408_v45, %v805_v44 }
 0x2cc   : > { %vm861_vm8 = vcmp.eq.s32.totalorder %v2419_v49, %v805_v44  ;;  %v842_v12 = vcvt.f32.s32 %v841_v62  ;;  %1671 = vmatmul.mubr.msk.f32.gmra.mrb[16].mxu1 %vm856_vm5, %v2053_v18  ;;  %1660 = vmatprep.mubr.msk.f32.mxu0 %vm859_vm6, %v2053_v18  ;;  %vm858_vm9 = vcmp.eq.s32.totalorder %v2405_v1, %v805_v44  ;;  %vm860_vm10 = vcmp.eq.s32.totalorder %v2411_v47, %v805_v44  ;;  %vm1917_vm11 = vmpackc.low %vm859_vm6, %vm855_vm2 }
 0x2cd   : > { %1435 = vst.msk [vmem:[%s2726_s19 + $0x20] sm:$0xff] %vm1430_vm4, %v825_v9  ;;  %1672 = vmatprep.mubr.msk.f32.mxu1 %vm861_vm8, %v2053_v18  ;;  %vm1919_vm12 = vmpackc.low %vm858_vm9, %vm854_vm7  ;;  %1918 = vmatprep.subr.msk.bf16.mxu0 %vm1917_vm11, %v2054_v43  ;;  %vm863_vm14 = vcmp.eq.s32.totalorder %v2408_v45, %v825_v9  ;;  %vm865_vm15 = vcmp.eq.s32.totalorder %v2419_v49, %v825_v9 }
 0x2ce   : > { %v845_v53 = vadd.s32 %v844_v58, %v842_v12  ;;  %vm2831_vm13 = vmpackc.low %vm860_vm10, %vm856_vm5  ;;  %1920 = vmatpush1.bf16.msk.msra.mxu0 %vm1919_vm12, %v2054_v43  ;;  %vm862_vm2 = vcmp.eq.s32.totalorder %v2405_v1, %v825_v9 }
 0x2cf   : > { %1661 = vmatmul.mubr.msk.f32.gmra.mrb[18].mxu0 %vm858_vm9, %v2053_v18  ;;  %vm1929_vm1 = vmpackc.low %vm861_vm8, %vm857_vm3  ;;  %vm864_vm9 = vcmp.eq.s32.totalorder %v2411_v47, %v825_v9 }
 0x2d0   : > { %1436 = vst.msk [vmem:[%s2726_s19 + $0x28] sm:$0xff] %vm1430_vm4, %v845_v53  ;;  %vm867_vm7 = vcmp.eq.s32.totalorder %v2408_v45, %v845_v53  ;;  %vm866_vm5 = vcmp.eq.s32.totalorder %v2405_v1, %v845_v53  ;;  %vm868_vm6 = vcmp.eq.s32.totalorder %v2411_v47, %v845_v53  ;;  %1673 = vmatmul.mubr.msk.f32.gmra.mrb[18].mxu1 %vm860_vm10, %v2053_v18  ;;  %v2893_v45 = vstv %s1178_s20  ;;  %s1988_s19 = scalar_lea.vmem %s1480_s15, 64  ;;  %s2056_s20 = smov [#allocation2]  }
 0x2d1   : > { %1930 = vmatprep.subr.msk.bf16.mxu1 %vm1929_vm1, %v2054_v43  ;;  %vm869_vm3 = vcmp.eq.s32.totalorder %v2419_v49, %v845_v53  ;;  %vm1923_vm4 = vmpackc.low %vm866_vm5, %vm862_vm2  ;;  %1662 = vmatprep.mubr.msk.f32.mxu0 %vm863_vm14, %v2053_v18  ;;  %v1211_v49 = vadd.s32 %v2893_v45, %v2405_v1  ;;  %v1187_v17 = vadd.s32 %v2893_v45, %v2291_v56  ;;  %p1989_p11 = scmp.ne.s32.totalorder %s1480_s15, %s1988_s19  ;;  %s1992_s21 = sshll.u32 %s2056_s20, 4  ;;  %s1993_s21 = int_to_ptr.vmem [resolvable:$false] %s1992_s21 }
 0x2d2   : > { %1932 = vmatpush1.bf16.msk.msra.mxu1 %vm2831_vm13, %v2054_v43  ;;  %vm1935_vm8 = vmpackc.low %vm868_vm6, %vm864_vm9  ;;  %1674 = vmatprep.mubr.msk.f32.mxu1 %vm865_vm15, %v2053_v18  ;;  %vm1247_vm13 = vcmask 392192   ;;  %v1188_v11 = vadd.s32 %v2893_v45, %v1181_v38  ;;  %v1189_v57 = vadd.s32 %v2893_v45, %v1182_v37  ;;  %v1190_v30 = vadd.s32 %v2893_v45, %v1183_v8  ;;  %s1994_s22 = scalar_lea.vmem %s1993_s21, 128  ;;  %p1995_p0 = scmp.lt.s32.totalorder %s1480_s15, %s1993_s21 }
 0x2d3   : > { %vm1921_vm10 = vmpackc.low %vm867_vm7, %vm863_vm14  ;;  %1663 = vmatmul.mubr.msk.f32.gmra.mrb[20].mxu0 %vm862_vm2, %v2053_v18  ;;  %vm1212_vm12 = vcmp.lt.s32.totalorder %v1211_v49, 128  ;;  %vm1193_vm14 = vcmp.lt.s32.totalorder %v1187_v17, 128  ;;  %v1191_v51 = vadd.s32 %v2893_v45, %v1184_v15  ;;  %p1990_p12 = pnand %p1989_p11, %p2135_p5  ;;  %p1996_p1 = scmp.lt.s32.totalorder %s1994_s22, %s1988_s19 }
 0x2d4   : > { %1922 = vmatprep.subr.msk.bf16.mxu0 %vm1921_vm10, %v2054_v43  ;;  %vm1933_vm11 = vmpackc.low %vm869_vm3, %vm865_vm15  ;;  %1675 = vmatmul.mubr.msk.f32.gmra.mrb[20].mxu1 %vm864_vm9, %v2053_v18  ;;  %v1684_v13 = vsel %vm1212_vm12, 1.0, %v2052_v7  ;;  %v1678_v24 = vsel %vm1193_vm14, 1.0, %v2052_v7  ;;  %vm1194_vm15 = vcmp.lt.s32.totalorder %v1188_v11, 128  ;;  %vm1195_vm1 = vcmp.lt.s32.totalorder %v1189_v57, 128 }
 0x2d5   : > { %1664 = vmatprep.mubr.msk.f32.mxu0 %vm867_vm7, %v2053_v18  ;;  %1676 = vmatprep.mubr.msk.f32.mxu1 %vm869_vm3, %v2053_v18  ;;  %v1679_v14 = vsel %vm1194_vm15, 1.0, %v2052_v7  ;;  %v1680_v48 = vsel %vm1195_vm1, 1.0, %v2052_v7  ;;  %vm1196_vm2 = vcmp.lt.s32.totalorder %v1190_v30, 128  ;;  %vm1197_vm7 = vcmp.lt.s32.totalorder %v1191_v51, 128  ;;  %p1991_p13 = pneg %p1990_p12  ;;  %p1997_p2 = por %p1996_p1, %p1995_p0 }
 0x2d6   : > { %1934 = vmatprep.subr.msk.bf16.mxu1 %vm1933_vm11, %v2054_v43  ;;  %1924 = vmatpush1.bf16.msk.msra.mxu0 %vm1923_vm4, %v2054_v43 }
 0x2d7   : > { %1936 = vmatpush1.bf16.msk.msra.mxu1 %vm1935_vm8, %v2054_v43  ;;  %1665 = vmatmul.mubr.msk.f32.gmra.mrb[22].mxu0 %vm866_vm5, %v2053_v18  ;;  %p1998_p3 = pnand %p1997_p2, %p1991_p13 }
 0x2d8   : > { %1677 = vmatmul.mubr.msk.f32.gmra.mrb[22].mxu1 %vm868_vm6, %v2053_v18  ;;  %1315 = vmatprep.mubr.f32.mxu0 %v2052_v7 }
 0x2d9   : > { %1386 = vmatprep.mubr.f32.mxu1 %v2052_v7 }
 0x2db   : > { %1697 = vmatmul.mubr.msk.f32.vlgmr.msra.gmra.mrb[24].mxu0 %vm1247_vm13, %v1684_v13 }
 0x2dc   : > { %1710 = vmatmul.mubr.msk.f32.vlgmr.msra.gmra.mrb[24].mxu1 %vm1247_vm13, %v1684_v13 }
 0x391   : > { %v1749_v47 = vpop.f32.mrb[12].mxu0  ;;  %v1799_v59 = vpop.f32.mrb[12].mxu1 }
 0x392   : > { %v1750_v10 = vpop.f32.mrb[13].mxu0  ;;  %v1800_v23 = vpop.f32.mrb[13].mxu1 }
 0x393   : > { %v1751_v34 = vadd.f32 %v1750_v10, %v1749_v47  ;;  %v1801_v33 = vadd.f32 %v1800_v23, %v1799_v59  ;;  %v1985_v59 = vld [vmem:[%s2260_s17 + $0x18] sm:$0xff]  ;;  %v1681_v23 = vsel %vm1196_vm2, 1.0, %v2052_v7 }
 0x395   : > { %v1144_v1 = vadd.f32 %v1801_v33, %v1751_v34 }
 0x397   : > { %v1172_v46 = vsub.f32 %v1144_v1, %v1982_v60  ;;  %1437 = vst.msk [vmem:[%s2905_s23] sm:$0xff] %vm352_vm0, %v1144_v1 }
 0x399   : > { %v1752_v61 = vpop.f32.mrb[14].mxu0  ;;  %v1802_v22 = vpop.f32.mrb[14].mxu1  ;;  %v1215_v63 = vmul.f32 %v1172_v46, %v1172_v46  ;;  %v1192_v46 = vadd.s32 %v2893_v45, %v1185_v54 }
 0x39a   : > { %v1753_v25 = vpop.f32.mrb[15].mxu0  ;;  %v1803_v50 = vpop.f32.mrb[15].mxu1 }
 0x39b   : > { %v1754_v39 = vadd.f32 %v1753_v25, %v1752_v61  ;;  %v1804_v2 = vadd.f32 %v1803_v50, %v1802_v22  ;;  %v1221_v3 = vmul.f32 %v1678_v24, %v1215_v63  ;;  %v1986_v50 = vld [vmem:[%s2260_s17 + $0x20] sm:$0xff]  ;;  %vm1198_vm5 = vcmp.lt.s32.totalorder %v1192_v46, 128 }
 0x39d   : > { %v1149_v40 = vadd.f32 %v1804_v2, %v1754_v39  ;;  %v1227_v35 = vsel %vm352_vm0, %v1221_v3, 0.0  ;;  %v1682_v2 = vsel %vm1197_vm7, 1.0, %v2052_v7 }
 0x39e   : > { %v1755_v41 = vpop.f32.mrb[16].mxu0 }
 0x39f   : > { %v1173_v5 = vsub.f32 %v1149_v40, %v1983_v4  ;;  %1438 = vst.msk [vmem:[%s2905_s23 + $0x8] sm:$0xff] %vm352_vm0, %v1149_v40  ;;  %v1805_v6 = vpop.f32.mrb[16].mxu1  ;;  %v1756_v52 = vpop.f32.mrb[17].mxu0 }
 0x3a0   : > { %v1757_v18 = vadd.f32 %v1756_v52, %v1755_v41  ;;  %v1806_v19 = vpop.f32.mrb[17].mxu1  ;;  %v1987_v41 = vld [vmem:[%s2260_s17 + $0x28] sm:$0xff]  ;;  %s1716_s17 = sshll.u32 %s2118_s28, 6 }
 0x3a1   : > { %v1216_v20 = vmul.f32 %v1173_v5, %v1173_v5  ;;  %v1807_v21 = vadd.f32 %v1806_v19, %v1805_v6  ;;  %v1683_v6 = vsel %vm1198_vm5, 1.0, %v2052_v7  ;;  %s2953_s13 = scalar_lea.hbm %s3000_s6, %s1716_s17 }
 0x3a2   : > { %v1758_v16 = vpop.f32.mrb[18].mxu0 }
 0x3a3   : > { %v1222_v26 = vmul.f32 %v1679_v14, %v1216_v20  ;;  %v1154_v27 = vadd.f32 %v1807_v21, %v1757_v18  ;;  %v1808_v28 = vpop.f32.mrb[18].mxu1  ;;  %v1759_v29 = vpop.f32.mrb[19].mxu0  ;;  %v2055_v20 = vmov 1966171168  }
 0x3a4   : > { %v1760_v31 = vadd.f32 %v1759_v29, %v1758_v16  ;;  %v1809_v32 = vpop.f32.mrb[19].mxu1  ;;  %v1403_v21 = vunpack.c.l.s4 %v2055_v20 }
 0x3a5   : > { %v1228_v36 = vsel %vm352_vm0, %v1222_v26, 0.0  ;;  %v1174_v43 = vsub.f32 %v1154_v27, %v1984_v42  ;;  %1439 = vst.msk [vmem:[%s2905_s23 + $0x10] sm:$0xff] %vm352_vm0, %v1154_v27  ;;  %v1810_v0 = vadd.f32 %v1809_v32, %v1808_v28 }
 0x3a6   : > { %v1761_v44 = vpop.f32.mrb[20].mxu0  ;;  %v1229_v58 = vadd.f32 %v1228_v36, %v1227_v35  ;;  %v1404_v16 = vunpack.c.0.s8 %v1403_v21 }
 0x3a7   : > { %v1217_v62 = vmul.f32 %v1174_v43, %v1174_v43  ;;  %v1159_v9 = vadd.f32 %v1810_v0, %v1760_v31  ;;  %v1811_v12 = vpop.f32.mrb[20].mxu1  ;;  %v1762_v53 = vpop.f32.mrb[21].mxu0 }
 0x3a8   : > { %v1763_v49 = vadd.f32 %v1762_v53, %v1761_v44  ;;  %v1812_v13 = vpop.f32.mrb[21].mxu1  ;;  %v1407_v27 = vsub.s32 %v1404_v16, %v2291_v56 }
 0x3a9   : > { %v1223_v47 = vmul.f32 %v1680_v48, %v1217_v62  ;;  %v1175_v17 = vsub.f32 %v1159_v9, %v1985_v59  ;;  %1440 = vst.msk [vmem:[%s2905_s23 + $0x18] sm:$0xff] %vm352_vm0, %v1159_v9  ;;  %v1813_v10 = vadd.f32 %v1812_v13, %v1811_v12 }
 0x3aa   : > { %v1764_v34 = vpop.f32.mrb[22].mxu0 }
 0x3ab   : > { %v1218_v33 = vmul.f32 %v1175_v17, %v1175_v17  ;;  %v1164_v38 = vadd.f32 %v1813_v10, %v1763_v49  ;;  %v1814_v1 = vpop.f32.mrb[22].mxu1  ;;  %v1765_v60 = vpop.f32.mrb[23].mxu0  ;;  %v1230_v61 = vsel %vm352_vm0, %v1223_v47, 0.0 }
 0x3ac   : > { %v1766_v22 = vadd.f32 %v1765_v60, %v1764_v34  ;;  %v1815_v11 = vpop.f32.mrb[23].mxu1  ;;  %v1231_v24 = vadd.f32 %v1230_v61, %v1229_v58 }
 0x3ad   : > { %v1224_v25 = vmul.f32 %v1681_v23, %v1218_v33  ;;  %v1176_v63 = vsub.f32 %v1164_v38, %v1986_v50  ;;  %1441 = vst.msk [vmem:[%s2905_s23 + $0x20] sm:$0xff] %vm352_vm0, %v1164_v38  ;;  %v1816_v39 = vadd.f32 %v1815_v11, %v1814_v1 }
 0x3ae   : > { %v1317_v15 = vpop.f32.mrb[24].mxu0 }
 0x3af   : > { %v1219_v37 = vmul.f32 %v1176_v63, %v1176_v63  ;;  %v1169_v3 = vadd.f32 %v1816_v39, %v1766_v22  ;;  %v1232_v45 = vsel %vm352_vm0, %v1224_v25, 0.0  ;;  %v1388_v26 = vpop.f32.mrb[24].mxu1  ;;  %v1319_v28 = vpop.f32.mrb[25].mxu0 }
 0x3b0   : > { %v1233_v40 = vadd.f32 %v1232_v45, %v1231_v24  ;;  %v1390_v7 = vpop.f32.mrb[25].mxu1  ;;  %v1400_v29 = vcombine.low %v1317_v15, %v1319_v28 }
 0x3b1   : > { %v1177_v4 = vsub.f32 %v1169_v3, %v1987_v41  ;;  %1442 = vst.msk [vmem:[%s2905_s23 + $0x28] sm:$0xff] %vm352_vm0, %v1169_v3  ;;  %v1225_v5 = vmul.f32 %v1682_v2, %v1219_v37  ;;  %v1401_v30 = vcombine.low %v1388_v26, %v1390_v7 }
 0x3b2   : > { %v1408_v31 = vrot.slane %v1400_v29, %v1407_v27 }
 0x3b3   : > { %v1220_v52 = vmul.f32 %v1177_v4, %v1177_v4  ;;  %v1234_v57 = vsel %vm352_vm0, %v1225_v5, 0.0  ;;  %v1415_v32 = vrot.slane %v1401_v30, %v1407_v27 }
 0x3b4   : > { %v1235_v8 = vadd.f32 %v1234_v57, %v1233_v40 }
 0x3b5   : > { %v1226_v14 = vmul.f32 %v1683_v6, %v1220_v52  ;;  %v1416_v35 = vcombine.low %v1408_v31, %v1415_v32 }
 0x3b7   : > { %v1236_v18 = vsel %vm352_vm0, %v1226_v14, 0.0  ;;  %vm1427_vm0 = vcmp.lt.s32.totalorder %v599_v55, 512  ;;  %v1423_v36 = vrot.slane %v1416_v35, %v1407_v27 }
 0x3b8   : > { %v1237_v19 = vadd.f32 %v1236_v18, %v1235_v8 }
 0x3b9   : > { %1429 = vst.msk [vmem:[%s287_s18] sm:$0xf] %vm1427_vm0, %v1423_v36 }
 0x3ba   : > { %1238 = vadd.xlane.f32.xlu0 %v1237_v19 }
 0x3bb   : > { %2001 = shalt.err (!%p1998_p3)
}
 0x3bc   : > { %s2002_s23 = scalar_lea.hbm %s2953_s13, 64  ;;  %s2006_s29 = scalar_lea.hbm %s3000_s6, 192 }
 0x3bd   : > { %p2003_p4 = scmp.ne.s32.totalorder %s2953_s13, %s2002_s23  ;;  %p2007_p9 = scmp.lt.u32.totalorder %s2953_s13, %s3000_s6 }
 0x3be   : > { %p2008_p10 = scmp.lt.u32.totalorder %s2006_s29, %s2002_s23  ;;  %p2010_p12 = scmp.lt.u32.totalorder %s2002_s23, %s2953_s13 }
 0x3bf   : > { %p2004_p7 = pnand %p2003_p4, %p2135_p5 }
 0x3c0   : > { %p2009_p11 = por %p2008_p10, %p2007_p9 }
 0x3c1   : > { %p2005_p8 = pneg %p2004_p7 }
 0x3c2   : > { %p2011_p13 = por %p2010_p12, %p2009_p11 }
 0x3c4   : > { %p2012_p0 = pnand %p2011_p13, %p2005_p8 }
 0x3c6   : > { %2015 = shalt.err (!%p2012_p0)
}
 0x3c7   : > { %1939 = dma.vmem_to_hbm [thread:$0]  (%p2135_p5), %s1480_s15, 64, %s2953_s13, %s1454_s16   ;;  %vm1394_vm6 = vcmask 0  }
 0x3c8   : > { %p311_p1 = scmp.lt.s32.totalorder %s2118_s28, 2 }
 0x3ca   : > { %s3018_s28 = smov (!%p311_p1, %s2118_s28), 2 }
 0x3cb   : > { %s313_s20 = scalar_lea.vmem %s3001_s7, %s3018_s28 }
 0x447   : > { %v1239_v55 = vpop.xlane.xlu0 %1238 }
 0x448   : > { %v1240_v56 = vrot.slane %v1239_v55, 4 }
 0x44a   : > { %v1241_v42 = vadd.f32 %v1240_v56, %v1239_v55 }
 0x44c   : > { %v1242_v43 = vrot.slane %v1241_v42, 2 }
 0x44e   : > { %v1243_v0 = vadd.f32 %v1242_v43, %v1241_v42 }
 0x450   : > { %v1244_v48 = vrot.slane %v1243_v0, 1 }
 0x452   : > { %v1245_v44 = vadd.f32 %v1244_v48, %v1243_v0 }
 0x454   : > { %1937 = vpush %v1245_v44 }
 0x485   : > { %s1938_s11 = spop %1937 }
 0x486   : > { %v1393_v51 = vstv %s1938_s11 }
 0x487   : > { %1395 = vst.msk [vmem:[%s313_s20] sm:$0x1] %vm1394_vm6, %v1393_v51 }
 0x488 PF: > { %p1945_p5 = scmp.ge.s32.totalorder %s2050_s27, 2  ;;  %s1510_s13 = sand.u32 1, %s2038_s24  }
 0x489   : > { %s1511_s15 = scalar_lea.sflag [#allocation3], %s1510_s13 }
 0x48a   : > { %p1942_p2 = pnand %p1945_p5, %p2139_p6 }
 0x48c   : > { %2033 = dma.done.wait (!%p1942_p2), %s1511_s15, 64  }
 0x48d   : > { %2035 = vsyncadd (!%p1942_p2), %s1511_s15, 4294967232  ;;  %p18_p3 = scmp.ge.s32.totalorder %s2122_s30, 5   ;;  %s3011_s24 = smov %s2042_s25 }
 0x48e   : > { %s3012_s25 = smov %s2046_s26  ;;  %s3013_s26 = smov %s2133_s10 }
 0x48f   : > { %s3014_s27 = smov %s2122_s30  ;;  %20 = sbr.rel (!%p18_p3) target bundleno = 3 (0x3), region = 107 }
 0x496   :  { %1522 = vsyncpa [#allocation3], 1 }
 0x497   :  { %1524 = vsyncpa [#allocation3 + $0x1], 1 }

</bundles_post_ra>
